<compile_context>
chip_gen: v6e
topology: v6e:2x2x1
jax: 0.10.0
libtpu: 0.0.40
codegen_flags: <defaults>
</compile_context>

<pallas_src>
import math

import jax
import jax.numpy as jnp
from jax import lax
from jax.experimental import pallas as pl
from jax.experimental.pallas import tpu as pltpu


_INV_SQRT2 = 1.0 / math.sqrt(2.0)


def _gelu_erf(x):
    # GeLU as used by LXMERT: x * 0.5 * (1 + erf(x / sqrt(2)))
    return x * 0.5 * (1.0 + lax.erf(x * _INV_SQRT2))


# ---------------------------------------------------------------------------
# Kernel 1: grid-invariant prefix (surrogate encoder + head up to LayerNorm)
# Runs once (no grid); whole operands live in VMEM.
# ---------------------------------------------------------------------------
def prefix_kernel(xcat_ref, lang_ref,
                  wvis_ref, wpool_ref, bpool_ref,
                  w1_ref, b1_ref, gamma_ref, beta_ref,
                  hn_ref):
    # Fused visual projection of [mean_feat | mean_pos]; bf16 x bf16 -> f32 acc.
    visn = jnp.dot(xcat_ref[...], wvis_ref[...],
                   preferred_element_type=jnp.float32)                 # (Bp, H)
    x = visn + lang_ref[...].astype(jnp.float32)                       # (Bp, H)

    # BERT-style pooler: tanh(Linear)
    pooled = jnp.tanh(
        jnp.dot(x.astype(jnp.bfloat16), wpool_ref[...],
                preferred_element_type=jnp.float32) + bpool_ref[...])  # (Bp, H)

    # logit_fc[0]: Linear(H -> 2H)
    h = jnp.dot(pooled.astype(jnp.bfloat16), w1_ref[...],
                preferred_element_type=jnp.float32) + b1_ref[...]      # (Bp, 2H)
    # logit_fc[1]: GeLU (erf form), f32
    h = _gelu_erf(h)
    # logit_fc[2]: BertLayerNorm(2H, eps=1e-12), stats in f32, rsqrt on EUP
    mu = jnp.mean(h, axis=-1, keepdims=True)
    var = jnp.mean((h - mu) ** 2, axis=-1, keepdims=True)
    hn = (h - mu) * lax.rsqrt(var + 1e-12)
    hn = hn * gamma_ref[...] + beta_ref[...]
    # bf16 for the answer-head matmul in call 2
    hn_ref[...] = hn.astype(hn_ref.dtype)


# ---------------------------------------------------------------------------
# Kernel 2: answer head — one lane-dense A-tile per grid step
# ---------------------------------------------------------------------------
def answer_kernel(hn_ref, w2_ref, b2_ref, out_ref):
    # logit_fc[3]: Linear(2H -> A); bf16 x bf16 -> f32 accumulation
    out_ref[...] = (jnp.dot(hn_ref[...], w2_ref[...],
                            preferred_element_type=jnp.float32) + b2_ref[...])


# ---------------------------------------------------------------------------
# Helpers
# ---------------------------------------------------------------------------
def _round_up(n, m):
    return -(-n // m) * m


def _pad_axis_to(x, size, axis):
    pad = size - x.shape[axis]
    if pad <= 0:
        return x
    widths = [(0, 0)] * x.ndim
    widths[axis] = (0, pad)
    return jnp.pad(x, widths)


# ---------------------------------------------------------------------------
# One-time parameter preprocessing (run at model load, NOT per forward call):
# Wf/Wp fusion, K padding to 128, answer padding to the tile size, bf16 casts.
# ---------------------------------------------------------------------------
def prepare_params(params, *, ta=512):
    A = params["w2"].shape[1]
    a128 = _round_up(A, 128)
    ta = min(ta, a128)                      # clamp tile for tiny answer counts
    ap = _round_up(A, ta)

    w_vis = jnp.concatenate([params["wf"], params["wp"]], axis=0)   # (F+4, H)
    kp = _round_up(w_vis.shape[0], 128)

    return {
        "w_vis": _pad_axis_to(w_vis, kp, 0).astype(jnp.bfloat16),        # (Kp, H)
        "wpool": params["wpool"].astype(jnp.bfloat16),                   # (H, H)
        "bpool": params["bpool"],                                        # (1, H) f32
        "w1":    params["w1"].astype(jnp.bfloat16),                      # (H, 2H)
        "b1":    params["b1"],                                           # (1, 2H) f32
        "gamma": params["gamma"],                                        # (1, 2H) f32
        "beta":  params["beta"],                                         # (1, 2H) f32
        "w2":    _pad_axis_to(params["w2"], ap, 1).astype(jnp.bfloat16), # (2H, Ap)
        "b2":    _pad_axis_to(params["b2"], ap, 1),                      # (1, Ap) f32
        "ta": int(ta),
        "num_answers": int(A),
    }


# ---------------------------------------------------------------------------
# Forward wrapper: activation pooling/padding (cheap, per-call) + two kernels
# ---------------------------------------------------------------------------
def vqa_forward(feat, pos, lang_emb, prep):
    B = feat.shape[0]
    H = prep["wpool"].shape[0]
    H2 = prep["w1"].shape[1]
    A = prep["num_answers"]
    ta = prep["ta"]
    Kp = prep["w_vis"].shape[0]
    Ap = prep["w2"].shape[1]

    # Algebraic prep (linearity: pool before project; fuse feat|pos columns).
    # NOTE: in a serving path, batch requests so Bp is 64-256 — extra batch
    # rows ride the same weight stream at ~zero extra HBM traffic.
    mean_feat = jnp.mean(feat, axis=1)                        # (B, F)
    mean_pos = jnp.mean(pos, axis=1)                          # (B, 4)
    xcat = jnp.concatenate([mean_feat, mean_pos], axis=-1)    # (B, F+4)
    lang = jnp.mean(lang_emb, axis=1)                         # (B, H)

    Bp = _round_up(B, 8)
    xcat = _pad_axis_to(_pad_axis_to(xcat, Kp, 1), Bp, 0).astype(jnp.bfloat16)
    lang = _pad_axis_to(lang, Bp, 0).astype(jnp.bfloat16)

    # --- call 1: grid-invariant prefix, computed once -----------------------
    hn = pl.pallas_call(
        prefix_kernel,
        out_shape=jax.ShapeDtypeStruct((Bp, H2), jnp.bfloat16),
    )(xcat, lang, prep["w_vis"], prep["wpool"], prep["bpool"],
      prep["w1"], prep["b1"], prep["gamma"], prep["beta"])

    # --- call 2: A-tiled answer head (weight-streaming, HBM-bound) ----------
    # With real LXMERT sizes (A~3129, ta=512) this gives grid >= 2, so the
    # "parallel" axis can shard across both v7x TensorCores.
    grid = (Ap // ta,)

    # VMEM budget: resident hn + double-buffered w2/b2/out tiles, 2x margin,
    # capped at 48 MiB (headroom on v7x's 64 MiB/TC).
    vmem_need = (2 * Bp * H2 * 2          # hn (bf16), conservatively x2
                 + 2 * (H2 * ta * 2)      # w2 tile (bf16), double-buffered
                 + 2 * (ta * 4)           # b2 tile (f32)
                 + 2 * (Bp * ta * 4))     # out tile (f32)
    vmem_limit = int(min(48 * 1024 * 1024, max(16 * 1024 * 1024, 2 * vmem_need)))

    # NOTE: once the per-step body is just this skinny matmul, sweeping
    # pipeline_mode=pl.Buffered(3) on the w2 spec can hide DMA issue latency.
    out = pl.pallas_call(
        answer_kernel,
        out_shape=jax.ShapeDtypeStruct((Bp, Ap), jnp.float32),
        grid=grid,
        in_specs=[
            pl.BlockSpec((Bp, H2), lambda j: (0, 0)),   # hn: grid-invariant
            pl.BlockSpec((H2, ta), lambda j: (0, j)),   # w2: pipelined A-tiles
            pl.BlockSpec((1, ta), lambda j: (0, j)),    # b2: matching A-tile
        ],
        out_specs=pl.BlockSpec((Bp, ta), lambda j: (0, j)),  # lane-dense stores
        compiler_params=pltpu.CompilerParams(
            dimension_semantics=("parallel",),
            vmem_limit_bytes=vmem_limit,
        ),
    )(hn, prep["w2"], prep["b2"])

    return out[:B, :A]


# ---------------------------------------------------------------------------
# Pure-JAX reference (same bf16/f32 math) for a correctness sanity check
# ---------------------------------------------------------------------------
def vqa_reference(feat, pos, lang_emb, p):
    xcat = jnp.concatenate([feat.mean(axis=1), pos.mean(axis=1)], -1).astype(jnp.bfloat16)
    w_vis = jnp.concatenate([p["wf"], p["wp"]], 0).astype(jnp.bfloat16)
    lang = lang_emb.mean(axis=1).astype(jnp.bfloat16)

    visn = jnp.dot(xcat, w_vis, preferred_element_type=jnp.float32)
    x = visn + lang.astype(jnp.float32)
    pooled = jnp.tanh(jnp.dot(x.astype(jnp.bfloat16), p["wpool"].astype(jnp.bfloat16),
                              preferred_element_type=jnp.float32) + p["bpool"])
    h = jnp.dot(pooled.astype(jnp.bfloat16), p["w1"].astype(jnp.bfloat16),
                preferred_element_type=jnp.float32) + p["b1"]
    h = h * 0.5 * (1.0 + lax.erf(h * _INV_SQRT2))
    mu = h.mean(-1, keepdims=True)
    var = ((h - mu) ** 2).mean(-1, keepdims=True)
    hn = (h - mu) * lax.rsqrt(var + 1e-12) * p["gamma"] + p["beta"]
    return jnp.dot(hn.astype(jnp.bfloat16), p["w2"].astype(jnp.bfloat16),
                   preferred_element_type=jnp.float32) + p["b2"]


# ---------------------------------------------------------------------------
# Deterministic parameter init (init_bert_weights: N(0, 0.02), zero bias,
# LayerNorm weight=1 / bias=0)
# ---------------------------------------------------------------------------
def make_params(key, F, H, A, vocab):
    ks = jax.random.split(key, 6)
    std = 0.02
    return {
        "emb":   jax.random.normal(ks[0], (vocab, H), jnp.float32) * std,
        "wf":    jax.random.normal(ks[1], (F, H), jnp.float32) * std,
        "wp":    jax.random.normal(ks[2], (4, H), jnp.float32) * std,
        "wpool": jax.random.normal(ks[3], (H, H), jnp.float32) * std,
        "bpool": jnp.zeros((1, H), jnp.float32),
        "w1":    jax.random.normal(ks[4], (H, 2 * H), jnp.float32) * std,
        "b1":    jnp.zeros((1, 2 * H), jnp.float32),
        "gamma": jnp.ones((1, 2 * H), jnp.float32),
        "beta":  jnp.zeros((1, 2 * H), jnp.float32),
        "w2":    jax.random.normal(ks[5], (2 * H, A), jnp.float32) * std,
        "b2":    jnp.zeros((1, A), jnp.float32),
    }


if __name__ == "__main__":
    # Small shapes consistent with the forward: feat (b, o, f), pos (b, o, 4),
    # sent as (b, seq) token ids (strings cannot enter a kernel).
    B, O, F, S, H, A, VOCAB = 2, 8, 64, 8, 32, 16, 100

    key = jax.random.PRNGKey(0)
    k_feat, k_pos, k_sent, k_par = jax.random.split(key, 4)

    feat = jax.random.normal(k_feat, (B, O, F), jnp.float32)
    pos = jax.random.uniform(k_pos, (B, O, 4), jnp.float32)
    sent_ids = jax.random.randint(k_sent, (B, S), 0, VOCAB, jnp.int32)

    params = make_params(k_par, F, H, A, VOCAB)

    # One-time weight prep (fusion / padding / bf16 cast) — done at load time.
    prep = prepare_params(params, ta=512)

    # Glue: token-id embedding lookup stays in plain JAX (gather).
    lang_emb = params["emb"][sent_ids]                       # (B, S, H)

    logits = vqa_forward(feat, pos, lang_emb, prep)
    logits = jax.block_until_ready(logits)

    ref = vqa_reference(feat, pos, lang_emb, params)
    assert logits.shape == (B, A)
    assert jnp.allclose(logits, ref, atol=1e-3, rtol=1e-3), "mismatch vs reference"

    print("KERNEL_OK")
</pallas_src>

<mosaic_0001>
module attributes {stable_mosaic.version = 11 : i64} {
  func.func @prefix_kernel(%arg0: memref<8x128xbf16, #tpu.memory_space<vmem>>, %arg1: memref<8x32xbf16, #tpu.memory_space<vmem>>, %arg2: memref<128x32xbf16, #tpu.memory_space<vmem>>, %arg3: memref<32x32xbf16, #tpu.memory_space<vmem>>, %arg4: memref<1x32xf32, #tpu.memory_space<vmem>>, %arg5: memref<32x64xbf16, #tpu.memory_space<vmem>>, %arg6: memref<1x64xf32, #tpu.memory_space<vmem>>, %arg7: memref<1x64xf32, #tpu.memory_space<vmem>>, %arg8: memref<1x64xf32, #tpu.memory_space<vmem>>, %arg9: memref<8x64xbf16, #tpu.memory_space<vmem>>) attributes {dimension_semantics = [], scalar_prefetch = 0 : i64, scratch_operands = 0 : i64, tpu.core_type = #tpu.core_type<tc>} {
    %c0 = arith.constant 0 : index
    %c0_0 = arith.constant 0 : index
    %0 = vector.load %arg0[%c0, %c0_0] : memref<8x128xbf16, #tpu.memory_space<vmem>>, vector<8x128xbf16>
    %c0_1 = arith.constant 0 : index
    %c0_2 = arith.constant 0 : index
    %1 = vector.load %arg2[%c0_1, %c0_2] : memref<128x32xbf16, #tpu.memory_space<vmem>>, vector<128x32xbf16>
    %cst = arith.constant dense<0.000000e+00> : vector<8x32xf32>
    %2 = tpu.matmul %0, %1, %cst {dimension_numbers = #tpu.dot_dimension_numbers<[1], [0], [0], [1], [0, 0, 1, 1], [], []>} : vector<8x128xbf16>, vector<128x32xbf16>, vector<8x32xf32> -> vector<8x32xf32>
    %c0_3 = arith.constant 0 : index
    %c0_4 = arith.constant 0 : index
    %3 = vector.load %arg1[%c0_3, %c0_4] : memref<8x32xbf16, #tpu.memory_space<vmem>>, vector<8x32xbf16>
    %4 = arith.extf %3 : vector<8x32xbf16> to vector<8x32xf32>
    %5 = arith.addf %2, %4 : vector<8x32xf32>
    %6 = arith.truncf %5 : vector<8x32xf32> to vector<8x32xbf16>
    %c0_5 = arith.constant 0 : index
    %c0_6 = arith.constant 0 : index
    %7 = vector.load %arg3[%c0_5, %c0_6] : memref<32x32xbf16, #tpu.memory_space<vmem>>, vector<32x32xbf16>
    %cst_7 = arith.constant dense<0.000000e+00> : vector<8x32xf32>
    %8 = tpu.matmul %6, %7, %cst_7 {dimension_numbers = #tpu.dot_dimension_numbers<[1], [0], [0], [1], [0, 0, 1, 1], [], []>} : vector<8x32xbf16>, vector<32x32xbf16>, vector<8x32xf32> -> vector<8x32xf32>
    %c0_8 = arith.constant 0 : index
    %c0_9 = arith.constant 0 : index
    %9 = vector.load %arg4[%c0_8, %c0_9] : memref<1x32xf32, #tpu.memory_space<vmem>>, vector<1x32xf32>
    %10 = vector.broadcast %9 : vector<1x32xf32> to vector<8x32xf32>
    %11 = arith.addf %8, %10 : vector<8x32xf32>
    %12 = math.tanh %11 : vector<8x32xf32>
    %13 = arith.truncf %12 : vector<8x32xf32> to vector<8x32xbf16>
    %c0_10 = arith.constant 0 : index
    %c0_11 = arith.constant 0 : index
    %14 = vector.load %arg5[%c0_10, %c0_11] : memref<32x64xbf16, #tpu.memory_space<vmem>>, vector<32x64xbf16>
    %cst_12 = arith.constant dense<0.000000e+00> : vector<8x64xf32>
    %15 = tpu.matmul %13, %14, %cst_12 {dimension_numbers = #tpu.dot_dimension_numbers<[1], [0], [0], [1], [0, 0, 1, 1], [], []>} : vector<8x32xbf16>, vector<32x64xbf16>, vector<8x64xf32> -> vector<8x64xf32>
    %c0_13 = arith.constant 0 : index
    %c0_14 = arith.constant 0 : index
    %16 = vector.load %arg6[%c0_13, %c0_14] : memref<1x64xf32, #tpu.memory_space<vmem>>, vector<1x64xf32>
    %17 = vector.broadcast %16 : vector<1x64xf32> to vector<8x64xf32>
    %18 = arith.addf %15, %17 : vector<8x64xf32>
    %cst_15 = arith.constant 5.000000e-01 : f32
    %19 = vector.broadcast %cst_15 : f32 to vector<8x64xf32>
    %20 = arith.mulf %18, %19 : vector<8x64xf32>
    %cst_16 = arith.constant 0.707106769 : f32
    %21 = vector.broadcast %cst_16 : f32 to vector<8x64xf32>
    %22 = arith.mulf %18, %21 : vector<8x64xf32>
    %23 = math.erf %22 : vector<8x64xf32>
    %cst_17 = arith.constant 1.000000e+00 : f32
    %24 = vector.broadcast %cst_17 : f32 to vector<8x64xf32>
    %25 = arith.addf %24, %23 : vector<8x64xf32>
    %26 = arith.mulf %20, %25 : vector<8x64xf32>
    %cst_18 = arith.constant dense<0.000000e+00> : vector<8xf32>
    %27 = vector.multi_reduction <add>, %26, %cst_18 [1] : vector<8x64xf32> to vector<8xf32>
    %28 = vector.shape_cast %27 : vector<8xf32> to vector<8x1xf32>
    %cst_19 = arith.constant 6.400000e+01 : f32
    %29 = vector.broadcast %cst_19 : f32 to vector<8x1xf32>
    %30 = arith.divf %28, %29 : vector<8x1xf32>
    %31 = vector.broadcast %30 : vector<8x1xf32> to vector<8x64xf32>
    %32 = arith.subf %26, %31 : vector<8x64xf32>
    %33 = arith.mulf %32, %32 : vector<8x64xf32>
    %cst_20 = arith.constant dense<0.000000e+00> : vector<8xf32>
    %34 = vector.multi_reduction <add>, %33, %cst_20 [1] : vector<8x64xf32> to vector<8xf32>
    %35 = vector.shape_cast %34 : vector<8xf32> to vector<8x1xf32>
    %cst_21 = arith.constant 6.400000e+01 : f32
    %36 = vector.broadcast %cst_21 : f32 to vector<8x1xf32>
    %37 = arith.divf %35, %36 : vector<8x1xf32>
    %38 = vector.broadcast %30 : vector<8x1xf32> to vector<8x64xf32>
    %39 = arith.subf %26, %38 : vector<8x64xf32>
    %cst_22 = arith.constant 9.99999996E-13 : f32
    %40 = vector.broadcast %cst_22 : f32 to vector<8x1xf32>
    %41 = arith.addf %37, %40 : vector<8x1xf32>
    %42 = math.rsqrt %41 : vector<8x1xf32>
    %43 = vector.broadcast %42 : vector<8x1xf32> to vector<8x64xf32>
    %44 = arith.mulf %39, %43 : vector<8x64xf32>
    %c0_23 = arith.constant 0 : index
    %c0_24 = arith.constant 0 : index
    %45 = vector.load %arg7[%c0_23, %c0_24] : memref<1x64xf32, #tpu.memory_space<vmem>>, vector<1x64xf32>
    %46 = vector.broadcast %45 : vector<1x64xf32> to vector<8x64xf32>
    %47 = arith.mulf %44, %46 : vector<8x64xf32>
    %c0_25 = arith.constant 0 : index
    %c0_26 = arith.constant 0 : index
    %48 = vector.load %arg8[%c0_25, %c0_26] : memref<1x64xf32, #tpu.memory_space<vmem>>, vector<1x64xf32>
    %49 = vector.broadcast %48 : vector<1x64xf32> to vector<8x64xf32>
    %50 = arith.addf %47, %49 : vector<8x64xf32>
    %51 = arith.truncf %50 : vector<8x64xf32> to vector<8x64xbf16>
    %c0_27 = arith.constant 0 : index
    %c0_28 = arith.constant 0 : index
    %52 = vector.load %arg9[%c0_27, %c0_28] : memref<8x64xbf16, #tpu.memory_space<vmem>>, vector<8x64xbf16>
    tpu.vector_store %arg9[%c0_27, %c0_28], %51 {strides = array<i32>} : memref<8x64xbf16, #tpu.memory_space<vmem>>, vector<8x64xbf16>,
    return
  }
}

</mosaic_0001>

<bundles_post_ra>
// kernel: tpu_custom_call.1
= control target key start
LH: loop header
LB: loop body
LE: loop exit
PB: predicated region body
PF: predicated region fallthrough
CT: control target
= control target key end

     0   :  { %v442_v1 = vmov 0.0   ;;  %vm443_vm0 = vmmov 0   ;;  %s557_s0 = inlined_call_operand.vmem [shape: bf16[8,128], index: 0, kind: input, shape index: {}]   ;;  %s558_s1 = inlined_call_operand.vmem [shape: bf16[8,32], index: 1, kind: input, shape index: {}]   ;;  %s559_s2 = inlined_call_operand.vmem [shape: bf16[128,32], index: 2, kind: input, shape index: {}]   ;;  %s560_s3 = inlined_call_operand.vmem [shape: bf16[32,32], index: 3, kind: input, shape index: {}]   ;;  %s561_s4 = inlined_call_operand.vmem [shape: f32[1,32], index: 4, kind: input, shape index: {}]   ;;  %s562_s5 = inlined_call_operand.vmem [shape: bf16[32,64], index: 5, kind: input, shape index: {}]   ;;  %s563_s6 = inlined_call_operand.vmem [shape: f32[1,64], index: 6, kind: input, shape index: {}]   ;;  %s564_s7 = inlined_call_operand.vmem [shape: f32[1,64], index: 7, kind: input, shape index: {}]   ;;  %s565_s8 = inlined_call_operand.vmem [shape: f32[1,64], index: 8, kind: input, shape index: {}]   ;;  %s566_s9 = inlined_call_operand.hbm [shape: bf16[8,64], index: 9, kind: output, shape index: {}]  }
   0x1   :  { %v402_v0 = vld [vmem:[%s559_s2 + $0x38] sm:$0xff]   ;;  %363 = vmatprep.subr.bf16.mxu0 %v442_v1  ;;  %383 = vmatprep.subr.bf16.mxu1 %v442_v1  ;;  %v403_v2 = vld [vmem:[%s559_s2 + $0x30] sm:$0xff]   ;;  %v404_v3 = vld [vmem:[%s559_s2 + $0x28] sm:$0xff]  }
   0x2   :  { %364 = vmatpush3.bf16.msra.mxu0 %v402_v0  ;;  %379 = vmatprep.mubr.msk.bf16.mxu0 %vm443_vm0, %v442_v1  ;;  %v405_v4 = vld [vmem:[%s559_s2 + $0x20] sm:$0xff]   ;;  %v410_v5 = vld [vmem:[%s560_s3 + $0x8] sm:$0xff]  }
   0x3   :  { %365 = vmatprep.subr.bf16.mxu0 %v442_v1  ;;  %387 = vmatprep.mubr.msk.bf16.mxu1 %vm443_vm0, %v442_v1 }
   0x4   :  { %384 = vmatpush3.bf16.msra.mxu1 %v410_v5 }
   0x6   :  { %366 = vmatpush3.bf16.msra.mxu0 %v403_v2 }
   0x7   :  { %367 = vmatprep.subr.bf16.mxu0 %v442_v1 }
   0xa   :  { %368 = vmatpush3.bf16.msra.mxu0 %v404_v3 }
   0xb   :  { %369 = vmatprep.subr.bf16.mxu0 %v442_v1 }
   0xc   :  { %14 = vsyncpa [#allocation3], 0  ;;  %385 = vmatprep.subr.bf16.mxu1 %v442_v1  ;;  %v406_v6 = vld [vmem:[%s559_s2 + $0x18] sm:$0xff]   ;;  %v407_v7 = vld [vmem:[%s559_s2 + $0x10] sm:$0xff]   ;;  %vm165_vm1 = vcmask 261120   ;;  %vm282_vm2 = vcmask 523264  }
   0xd   :  { %v408_v8 = vld [vmem:[%s559_s2 + $0x8] sm:$0xff]   ;;  %v409_v9 = vld [vmem:[%s559_s2] sm:$0xff]   ;;  %s444_s17 = smov [#allocation2]   ;;  %vm314_vm3 = vcmask 519168  }
   0xe   :  { %370 = vmatpush3.bf16.msra.mxu0 %v405_v4  ;;  %v34_v10 = vld [vmem:[%s557_s0] sm:$0xf]  ;;  %v412_v20 = vld [vmem:[%s562_s5 + $0x8] sm:$0xff]   ;;  %s322_s18 = sshll.u32 %s444_s17, 4  ;;  %s323_s18 = int_to_ptr.vmem [resolvable:$true] %s322_s18 }
   0xf   :  { %371 = vmatprep.subr.bf16.mxu0 %v442_v1  ;;  %v411_v11 = vld [vmem:[%s560_s3] sm:$0xff]   ;;  %s420_s19 = scalar_lea.vmem %s323_s18, 64  ;;  %p425_p1 = scmp.lt.s32.totalorder %s323_s18, %s323_s18 }
  0x10   :  { %386 = vmatpush3.bf16.msra.mxu1 %v411_v11  ;;  %v51_v12 = vld [vmem:[%s558_s1] sm:$0xf]  ;;  %p421_p0 = scmp.ne.s32.totalorder %s323_s18, %s420_s19  ;;  %p426_p2 = scmp.lt.s32.totalorder %s420_s19, %s420_s19 }
  0x11   :  { %391 = vmatprep.subr.bf16.mxu1 %v442_v1  ;;  %v52_v13 = vunpack.c.l.bf16 %v51_v12  ;;  %v413_v21 = vld [vmem:[%s562_s5] sm:$0xff]  }
  0x12   :  { %372 = vmatpush3.bf16.msra.mxu0 %v406_v6  ;;  %v338_v22 = vld [vmem:[%s561_s4] ss:$0 sm:$0xff]  ;;  %p427_p3 = por %p426_p2, %p425_p1 }
  0x13   :  { %373 = vmatprep.subr.bf16.mxu0 %v442_v1  ;;  %v342_v30 = vld [vmem:[%s563_s6] ss:$0 sm:$0xff] }
  0x14   :  { %v346_v51 = vld [vmem:[%s564_s7] ss:$0 sm:$0xff]  ;;  %p428_p4 = pnand %p427_p3, %p421_p0 }
  0x15   :  { %v347_v53 = vld [vmem:[%s565_s8] ss:$0 sm:$0xff] }
  0x16   :  { %374 = vmatpush3.bf16.msra.mxu0 %v407_v7 }
  0x17   :  { %375 = vmatprep.subr.bf16.mxu0 %v442_v1 }
  0x1a   :  { %376 = vmatpush3.bf16.msra.mxu0 %v408_v8 }
  0x1b   :  { %377 = vmatprep.subr.bf16.mxu0 %v442_v1 }
  0x1e   :  { %378 = vmatpush3.bf16.msra.mxu0 %v409_v9 }
  0x21   :  { %380 = vmatmul.mubr.bf16.vlgmr.msra.gmra.mxu0 %v34_v10 }
  0xe1   :  { %v135_v14 = vpop.f32.mrf.mxu0 }
  0xe2   :  { %v136_v15 = vadd.f32 %v135_v14, %v52_v13 }
  0xe3   :  { %v381_v16 = vpop.f32.mrf.mxu0 }
  0xe4   :  { %v141_v17 = vpack.c.bf16 %v136_v15, %v136_v15 }
  0xe5   :  { %v138_v18 = vpop.f32.mrf.mxu0 }
  0xe6   :  { %388 = vmatmul.mubr.msk.bf16.vlgmr.msra.gmra.mxu1 %vm165_vm1, %v141_v17 }
  0xe7   :  { %v382_v19 = vpop.f32.mrf.mxu0  ;;  %395 = vmatprep.mubr.msk.bf16.mxu1 %vm443_vm0, %v442_v1  ;;  %392 = vmatpush3.bf16.msra.mxu1 %v412_v20 }
  0xe8   :  { %393 = vmatprep.subr.bf16.mxu1 %v442_v1 }
  0xeb   :  { %394 = vmatpush3.bf16.msra.mxu1 %v413_v21 }
 0x1a6   :  { %v203_v23 = vpop.f32.mrf.mxu1 }
 0x1a7   :  { %v204_v24 = vadd.f32 %v338_v22, %v203_v23 }
 0x1a8   :  { %v389_v25 = vpop.f32.mrf.mxu1 }
 0x1a9   :  { %414 = vtanh.f32 %v204_v24 }
 0x1aa   :  { %v206_v26 = vpop.f32.mrf.mxu1 }
 0x1ac   :  { %v390_v27 = vpop.f32.mrf.mxu1 }
 0x1b6   :  { %v415_v28 = vpop.eup %414 }
 0x1b7   :  { %v210_v29 = vpack.c.bf16 %v415_v28, %v415_v28 }
 0x1b9   :  { %396 = vmatmul.mubr.msk.bf16.vlgmr.msra.gmra.mxu1 %vm165_vm1, %v210_v29 }
 0x279   :  { %v271_v31 = vpop.f32.mrf.mxu1 }
 0x27a   :  { %v272_v32 = vadd.f32 %v342_v30, %v271_v31 }
 0x27b   :  { %v397_v33 = vpop.f32.mrf.mxu1 }
 0x27c   :  { %v278_v34 = vmul.f32 0.70710677, %v272_v32  ;;  %v277_v38 = vmul.f32 0.5, %v272_v32 }
 0x27d   :  { %v274_v35 = vpop.f32.mrf.mxu1 }
 0x27e   :  { %416 = verf.f32 %v278_v34 }
 0x27f   :  { %v398_v36 = vpop.f32.mrf.mxu1 }
 0x28b   :  { %v417_v37 = vpop.eup %416 }
 0x28c   :  { %v280_v39 = vadd.f32 1.0, %v417_v37 }
 0x28e   :  { %v281_v40 = vmul.f32 %v280_v39, %v277_v38 }
 0x290   :  { %v283_v41 = vsel %vm282_vm2, %v281_v40, 0.0 }
 0x291   :  { %284 = vadd.xlane.f32.xlu0 %v283_v41 }
 0x31a   :  { %v285_v42 = vpop.xlane.xlu0 %284 }
 0x31b   :  { %v287_v43 = vmul.f32 0.015625, %v285_v42 }
 0x31d   :  { %v288_v44 = vsub.f32 %v281_v40, %v287_v43 }
 0x31f   :  { %v289_v45 = vmul.f32 %v288_v44, %v288_v44 }
 0x321   :  { %v290_v46 = vsel %vm282_vm2, %v289_v45, 0.0 }
 0x322   :  { %291 = vadd.xlane.f32.xlu0 %v290_v46 }
 0x3ab   :  { %v292_v47 = vpop.xlane.xlu0 %291 }
 0x3ac   :  { %v293_v48 = vmul.f32 0.015625, %v292_v47 }
 0x3ae   :  { %v294_v49 = vadd.f32 1e-12, %v293_v48 }
 0x3b0   :  { %418 = vrsqrt.f32 %v294_v49 }
 0x3bd   :  { %v419_v50 = vpop.eup %418 }
 0x3be   :  { %v296_v52 = vmul.f32 %v419_v50, %v288_v44 }
 0x3c0   :  { %v304_v54 = vmul.f32 %v346_v51, %v296_v52 }
 0x3c2   :  { %v312_v55 = vadd.f32 %v347_v53, %v304_v54 }
 0x3c4   :  { %v313_v56 = vpack.c.bf16 %v312_v55, %v312_v55 }
 0x3c6   :  { %315 = vst.msk [vmem:[#allocation2] sm:$0xf] %vm314_vm3, %v313_v56 }
 0x3c7   :  { %431 = shalt.err (!%p428_p4)
}
 0x3c8   :  { %325 = dma.vmem_to_hbm [thread:$0]  %s323_s18, 64, %s566_s9, [#allocation3]  }
 0x3c9   :  { %440 = dma.done.wait [#allocation3], 64  }
 0x3ca   :  { %441 = vsyncadd [#allocation3], 4294967232 }
 0x3cb   :  { %329 = vsyncpa [#allocation3], 1 }

</bundles_post_ra>
